<compile_context>
chip_gen: v6e
topology: v6e:2x2x1
jax: 0.10.0
libtpu: 0.0.40
codegen_flags: <defaults>
</compile_context>

<pallas_src>
import math
import functools

import jax
import jax.numpy as jnp
from jax import lax
from jax.experimental import pallas as pl
from jax.experimental.pallas import tpu as pltpu


def _round_up(x, m):
    return ((x + m - 1) // m) * m


def _round_down(x, m):
    return (x // m) * m


def _vmem_limit_bytes():
    """Generation-aware scoped-VMEM request (None -> compiler default)."""
    try:
        cap = int(pltpu.get_tpu_info().vmem_capacity_bytes)
    except Exception:
        return None
    # Leave >=16 MiB headroom for Mosaic internal scratch; never ask for more
    # than ~100 MiB even on 128 MiB parts.
    return int(min(max(cap - (16 << 20), 16 << 20), 100 << 20))


def _make_transnet_kernel(time_embed_dim: int, x_dim: int, c_dim: int,
                          n_levels: int, has_cond: bool):
    """Fused gather + timestep-embedding + concat kernel (static dims)."""
    td = time_embed_dim
    half = td // 2
    log_max_period = math.log(10000.0)

    def kernel(steps_ref, noise_ref, x_ref, *rest):
        # steps_ref: (TB, 1)        int32
        # noise_ref: (1, n_levels)  float32   (whole table, resident)
        # x_ref:     (TB, x_dim)    float32   (== `inputs`)
        # [c_ref]:   (TB, c_dim)    float32   (only when cond_x1=True)
        # out_ref:   (TB, td + x_dim + c_dim)
        if has_cond:
            c_ref, out_ref = rest
        else:
            (out_ref,) = rest

        # --- t = noise_levels[steps] : one-hot gather (VPU compare + XLU reduce) ---
        idx = steps_ref[...]                                          # (TB, 1)
        lvl_ids = lax.broadcasted_iota(jnp.int32, (1, n_levels), 1)   # (1, L)
        onehot = (idx == lvl_ids).astype(jnp.float32)                 # (TB, L)
        t = jnp.sum(onehot * noise_ref[...], axis=-1, keepdims=True)  # (TB, 1)

        # --- timestep embedding ---
        if td > 1:
            io = lax.broadcasted_iota(jnp.int32, (1, half), 1).astype(jnp.float32)
            freqs = jnp.exp((-log_max_period / half) * io)            # (1, half)
            args = t * freqs                                          # (TB, half)
            parts = [jnp.cos(args), jnp.sin(args)]
            if td % 2:                                                # odd dim -> zero col
                parts.append(jnp.zeros_like(t))
        else:
            parts = [t]                                               # t.unsqueeze(-1)

        # --- concat([t_emb, inputs, cond-or-inputs]) built in-register ---
        x = x_ref[...]                                                # single load, reused
        parts.append(x)
        parts.append(c_ref[...] if has_cond else x)

        # Single full-width (lane-dense) store of the whole tile.
        out_ref[...] = jnp.concatenate(parts, axis=-1).astype(out_ref.dtype)

    return kernel


class TransNetPallas:
    """JAX/Pallas port of TransNet (forward pass up to the Transformer input)."""

    # Byte target for one set of tiles (x2 for double-buffering accounted below).
    _TILE_BYTE_BUDGET = 8 << 20

    def __init__(self, noise_levels, x_dim, time_embed_dim, cond_x1=False,
                 out_dtype=jnp.float32):
        self.cond_x1 = cond_x1
        self.noise_levels = jnp.asarray(noise_levels, dtype=jnp.float32)
        self._noise2 = self.noise_levels.reshape(1, -1)
        # Same rule as the PyTorch __init__:
        self.time_embed_dim = x_dim if time_embed_dim != 1 else 1
        self.x_dim = x_dim
        self.out_dtype = out_dtype
        self._vmem_limit = _vmem_limit_bytes()

    # ------------------------------------------------------------------ tiling
    def _pick_tb(self, N, c_dim):
        """Byte-budgeted batch tile, capped so the grid has >=4 steps."""
        if N < 8:
            return N                                    # full-array block
        td, xd = self.time_embed_dim, self.x_dim
        out_dim = td + xd + c_dim
        in_row = 4 * (1 + xd + (c_dim if self.cond_x1 else 0))   # steps + inputs (+cond)
        out_row = 4 * out_dim
        row_bytes = in_row + out_row
        tb_budget = max(8, _round_down(self._TILE_BYTE_BUDGET // (2 * row_bytes), 8))
        tb_megacore = max(8, _round_up(pl.cdiv(N, 4), 8))        # >=4 grid steps when possible
        return max(8, min(tb_budget, tb_megacore, _round_up(N, 8)))

    # --------------------------------------------------------------- the call
    @functools.lru_cache(maxsize=None)
    def _build_call(self, N, c_dim, TB):
        td, xd = self.time_embed_dim, self.x_dim
        out_dim = td + xd + c_dim
        L = int(self.noise_levels.shape[0])
        has_cond = self.cond_x1

        kernel = _make_transnet_kernel(td, xd, c_dim, L, has_cond)

        in_specs = [
            pl.BlockSpec((TB, 1), lambda i: (i, 0)),      # steps (int32)
            pl.BlockSpec((1, L), lambda i: (0, 0)),       # noise_levels table
            pl.BlockSpec((TB, xd), lambda i: (i, 0)),     # inputs
        ]
        if has_cond:
            in_specs.append(pl.BlockSpec((TB, c_dim), lambda i: (i, 0)))

        return pl.pallas_call(
            kernel,
            out_shape=jax.ShapeDtypeStruct((N, out_dim), self.out_dtype),
            grid=(pl.cdiv(N, TB),),
            in_specs=in_specs,
            out_specs=pl.BlockSpec((TB, out_dim), lambda i: (i, 0)),
            compiler_params=pltpu.CompilerParams(
                # Batch axis is independent -> shard across v7x's 2 TCs.
                dimension_semantics=("parallel",),
                vmem_limit_bytes=self._vmem_limit,
            ),
        )

    def __call__(self, inputs, steps, cond=None):
        inputs = jnp.asarray(inputs, dtype=jnp.float32)
        N, xd = inputs.shape
        assert xd == self.x_dim

        steps = jnp.asarray(steps, dtype=jnp.int32)
        assert steps.ndim == 1 and steps.shape[0] == N
        steps2 = steps.reshape(N, 1)

        if self.cond_x1:
            cond = jnp.asarray(cond, dtype=jnp.float32)
            assert cond.shape[0] == N
            c_dim = int(cond.shape[1])
            operands = (steps2, self._noise2, inputs, cond)
        else:
            # cond_x1=False: `inputs` is passed once and written to both slices
            # inside the kernel (halves the dominant input HBM read traffic).
            c_dim = self.x_dim
            operands = (steps2, self._noise2, inputs)

        TB = self._pick_tb(N, c_dim)
        x = self._build_call(N, c_dim, TB)(*operands)

        # TODO(synk): `self.net = Transformer(...)` source not provided; the
        # downstream `output = self.net(x) + inputs` cannot be reproduced, so
        # return the Transformer input x (fuse this kernel into the net's first
        # matmul once its weights/source are available).
        return x


# ----------------------------------------------------------------- reference
def _reference_forward(noise_levels, inputs, steps, time_embed_dim, second=None):
    """Pure-JAX reference of the same computation (for correctness checks)."""
    t = noise_levels[steps].astype(jnp.float32)
    if time_embed_dim > 1:
        half = time_embed_dim // 2
        freqs = jnp.exp(-math.log(10000.0)
                        * jnp.arange(half, dtype=jnp.float32) / half)
        args = t[:, None] * freqs[None]
        emb = jnp.concatenate([jnp.cos(args), jnp.sin(args)], axis=-1)
        if time_embed_dim % 2:
            emb = jnp.concatenate([emb, jnp.zeros_like(emb[:, :1])], axis=-1)
    else:
        emb = t[:, None]
    if second is None:
        second = inputs
    return jnp.concatenate([emb, inputs, second], axis=-1)


if __name__ == "__main__":
    key = jax.random.PRNGKey(0)
    k_inp, k_steps, k_cond, k_inp2 = jax.random.split(key, 4)

    # Small shapes consistent with the module's forward.
    N = 8                 # batch
    x_dim = 8             # feature dim (even -> no zero-pad column)
    time_embed_dim = 8    # != 1  =>  effective time_embed_dim = x_dim
    n_levels = 50

    noise_levels = jnp.linspace(0.0, 1.0, n_levels, dtype=jnp.float32)
    inputs = jax.random.normal(k_inp, (N, x_dim), dtype=jnp.float32)
    steps = jax.random.randint(k_steps, (N,), 0, n_levels)
    cond = jax.random.normal(k_cond, (N, x_dim), dtype=jnp.float32)

    # ---- cond_x1 = False (single `inputs` operand, written twice) ----
    model = TransNetPallas(noise_levels, x_dim, time_embed_dim, cond_x1=False)
    out = jax.block_until_ready(model(inputs, steps))
    ref = _reference_forward(noise_levels, inputs, steps, model.time_embed_dim)
    assert out.shape == ref.shape == (N, 3 * x_dim)
    assert jnp.allclose(out, ref, atol=1e-5, rtol=1e-5), "mismatch (cond_x1=False)"

    # ---- cond_x1 = True (explicit cond operand) ----
    model_c = TransNetPallas(noise_levels, x_dim, time_embed_dim, cond_x1=True)
    out_c = jax.block_until_ready(model_c(inputs, steps, cond=cond))
    ref_c = _reference_forward(noise_levels, inputs, steps, model_c.time_embed_dim,
                               second=cond)
    assert out_c.shape == ref_c.shape
    assert jnp.allclose(out_c, ref_c, atol=1e-5, rtol=1e-5), "mismatch (cond_x1=True)"

    # ---- odd time_embed_dim (exercises the zero-pad column branch) ----
    x_dim_odd = 7
    inputs_odd = jax.random.normal(k_inp2, (N, x_dim_odd), dtype=jnp.float32)
    model_o = TransNetPallas(noise_levels, x_dim_odd, time_embed_dim=7, cond_x1=False)
    out_o = jax.block_until_ready(model_o(inputs_odd, steps))
    ref_o = _reference_forward(noise_levels, inputs_odd, steps, model_o.time_embed_dim)
    assert out_o.shape == ref_o.shape
    assert jnp.allclose(out_o, ref_o, atol=1e-5, rtol=1e-5), "mismatch (odd dim)"

    # ---- time_embed_dim == 1 (t.unsqueeze(-1) branch) ----
    model_1 = TransNetPallas(noise_levels, x_dim, time_embed_dim=1, cond_x1=False)
    out_1 = jax.block_until_ready(model_1(inputs, steps))
    ref_1 = _reference_forward(noise_levels, inputs, steps, 1)
    assert out_1.shape == ref_1.shape
    assert jnp.allclose(out_1, ref_1, atol=1e-5, rtol=1e-5), "mismatch (td==1)"

    print("KERNEL_OK")
</pallas_src>

<mosaic_0001>
module attributes {stable_mosaic.version = 11 : i64} {
  func.func @kernel(%arg0: i32, %arg1: memref<8x1xi32, #tpu.memory_space<vmem>>, %arg2: memref<1x50xf32, #tpu.memory_space<vmem>>, %arg3: memref<8x8xf32, #tpu.memory_space<vmem>>, %arg4: memref<8x24xf32, #tpu.memory_space<vmem>>) attributes {dimension_semantics = [#tpu.dimension_semantics<parallel>], iteration_bounds = array<i64: 1>, scalar_prefetch = 0 : i64, scratch_operands = 0 : i64, tpu.core_type = #tpu.core_type<tc>, window_params = [{transform_indices = @transform_0, window_bounds = array<i64: 8, 1>}, {pipeline_mode = #tpu.pipeline_mode<synchronous>, transform_indices = @transform_1, window_bounds = array<i64: 1, 50>}, {transform_indices = @transform_2, window_bounds = array<i64: 8, 8>}, {transform_indices = @transform_3, window_bounds = array<i64: 8, 24>}]} {
    %c0 = arith.constant 0 : index
    %c0_0 = arith.constant 0 : index
    %0 = vector.load %arg1[%c0, %c0_0] : memref<8x1xi32, #tpu.memory_space<vmem>>, vector<8x1xi32>
    %1 = tpu.iota {dimensions = array<i32: 1>} : vector<1x50xi32>
    %2 = vector.broadcast %0 : vector<8x1xi32> to vector<8x50xi32>
    %3 = vector.broadcast %1 : vector<1x50xi32> to vector<8x50xi32>
    %4 = arith.cmpi eq, %2, %3 : vector<8x50xi32>
    %5 = arith.extui %4 : vector<8x50xi1> to vector<8x50xi32>
    %6 = arith.sitofp %5 : vector<8x50xi32> to vector<8x50xf32>
    %c0_1 = arith.constant 0 : index
    %c0_2 = arith.constant 0 : index
    %7 = vector.load %arg2[%c0_1, %c0_2] : memref<1x50xf32, #tpu.memory_space<vmem>>, vector<1x50xf32>
    %8 = vector.broadcast %7 : vector<1x50xf32> to vector<8x50xf32>
    %9 = arith.mulf %6, %8 : vector<8x50xf32>
    %cst = arith.constant dense<0.000000e+00> : vector<8xf32>
    %10 = vector.multi_reduction <add>, %9, %cst [1] : vector<8x50xf32> to vector<8xf32>
    %11 = vector.shape_cast %10 : vector<8xf32> to vector<8x1xf32>
    %12 = tpu.iota {dimensions = array<i32: 1>} : vector<1x4xi32>
    %13 = arith.sitofp %12 : vector<1x4xi32> to vector<1x4xf32>
    %cst_3 = arith.constant -2.30258512 : f32
    %14 = vector.broadcast %cst_3 : f32 to vector<1x4xf32>
    %15 = arith.mulf %14, %13 : vector<1x4xf32>
    %16 = math.exp %15 : vector<1x4xf32>
    %17 = vector.broadcast %11 : vector<8x1xf32> to vector<8x4xf32>
    %18 = vector.broadcast %16 : vector<1x4xf32> to vector<8x4xf32>
    %19 = arith.mulf %17, %18 : vector<8x4xf32>
    %20 = math.cos %19 : vector<8x4xf32>
    %21 = math.sin %19 : vector<8x4xf32>
    %c0_4 = arith.constant 0 : index
    %c0_5 = arith.constant 0 : index
    %22 = vector.load %arg3[%c0_4, %c0_5] : memref<8x8xf32, #tpu.memory_space<vmem>>, vector<8x8xf32>
    %23 = tpu.concatenate %20, %21, %22, %22 in 1 : vector<8x4xf32>, vector<8x4xf32>, vector<8x8xf32>, vector<8x8xf32> -> vector<8x24xf32>
    %c0_6 = arith.constant 0 : index
    %c0_7 = arith.constant 0 : index
    %24 = vector.load %arg4[%c0_6, %c0_7] : memref<8x24xf32, #tpu.memory_space<vmem>>, vector<8x24xf32>
    tpu.vector_store %arg4[%c0_6, %c0_7], %23 {strides = array<i32>} : memref<8x24xf32, #tpu.memory_space<vmem>>, vector<8x24xf32>,
    return
  }
  func.func @transform_0(%arg0: i32) -> (i32, i32) {
    %c0_i32 = arith.constant 0 : i32
    %c0_i32_0 = arith.constant 0 : i32
    return %arg0, %c0_i32 : i32, i32
  }
  func.func @transform_1(%arg0: i32) -> (i32, i32) {
    %c0_i32 = arith.constant 0 : i32
    %c0_i32_0 = arith.constant 0 : i32
    %c0_i32_1 = arith.constant 0 : i32
    return %c0_i32, %c0_i32_0 : i32, i32
  }
  func.func @transform_2(%arg0: i32) -> (i32, i32) {
    %c0_i32 = arith.constant 0 : i32
    %c0_i32_0 = arith.constant 0 : i32
    return %arg0, %c0_i32 : i32, i32
  }
  func.func @transform_3(%arg0: i32) -> (i32, i32) {
    %c0_i32 = arith.constant 0 : i32
    %c0_i32_0 = arith.constant 0 : i32
    return %arg0, %c0_i32 : i32, i32
  }
}

</mosaic_0001>

<bundles_post_ra>
// kernel: tpu_custom_call.1
= control target key start
LH: loop header
LB: loop body
LE: loop exit
PB: predicated region body
PF: predicated region fallthrough
CT: control target
= control target key end

     0   :  { %v337_v1 = vmov 0   ;;  %s406_s0 = inlined_call_operand.vmem [shape: s32[8,1], index: 0, kind: input, shape index: {}]   ;;  %s407_s1 = inlined_call_operand.vmem [shape: f32[1,50], index: 1, kind: input, shape index: {}]   ;;  %s408_s2 = inlined_call_operand.vmem [shape: f32[8,8], index: 2, kind: input, shape index: {}]   ;;  %s409_s3 = inlined_call_operand.hbm [shape: f32[8,24], index: 3, kind: output, shape index: {}]  }
   0x1   :  { %v15_v0 = vld [vmem:[%s406_s0] sm:$0xff]  ;;  %308 = vset.pattern.permute.xlu0 %v337_v1 }
   0x2   :  { %8 = vsyncpa [#allocation3], 0  ;;  %19 = vperm.xlu0 %308, %v15_v0   ;;  %v16_v2 = vlaneseq  ;;  %v283_v5 = vld [vmem:[%s407_s1] ss:$0 sm:$0xff]  ;;  %v338_v6 = vmov 0.0   ;;  %vm32_vm1 = vcmask 408576  }
   0x3   :  { %v378_v10 = vld [vmem:[%s408_s2] sm:$0xff]  ;;  %s339_s17 = smov 8   ;;  %v340_v27 = vmov 683565275   ;;  %v341_v29 = vmov 2475754826  }
   0x4   :  { %v17_v3 = vand.u32 127, %v16_v2  ;;  %254 = vrot.lane.b32.xlu1 %v378_v10, %s339_s17  ;;  %v342_v32 = vmov 2131351028   ;;  %v343_v35 = vmov 2102212464   ;;  %s346_s1 = smov 4  }
   0x5   :  { %v344_v38 = vmov 920167782   ;;  %v345_v41 = vmov 1326507024   ;;  %s347_s2 = smov 16   ;;  %s348_s18 = smov [#allocation2]  }
   0x6   :  { %v36_v11 = vcvt.s32.f32 %v17_v3  ;;  %s274_s19 = sshll.u32 %s348_s18, 4  ;;  %s275_s19 = int_to_ptr.vmem [resolvable:$true] %s274_s19 }
   0x7   :  { %s315_s20 = scalar_lea.vmem %s275_s19, 128  ;;  %p320_p1 = scmp.lt.s32.totalorder %s275_s19, %s275_s19 }
   0x8   :  { %v37_v12 = vmul.f32 -2.3025851, %v36_v11  ;;  %p316_p0 = scmp.ne.s32.totalorder %s275_s19, %s315_s20  ;;  %p321_p2 = scmp.lt.s32.totalorder %s315_s20, %s315_s20 }
   0xa   :  { %v38_v13 = vmul.f32 1.442695, %v37_v12  ;;  %p322_p3 = por %p321_p2, %p320_p1 }
   0xc   :  { %309 = vpow2.f32 %v38_v13  ;;  %p323_p4 = pnand %p322_p3, %p316_p0 }
  0x19   :  { %v310_v14 = vpop.eup %309 }
  0x7d   :  { %v20_v4 = vpop.permute.xlu0 %19 }
  0x7e   :  { %vm21_vm0 = vcmp.eq.s32.totalorder %v20_v4, %v17_v3 }
  0x7f   :  { %v282_v7 = vsel %vm21_vm0, 1.0, %v338_v6 }
  0x80   :  { %v31_v8 = vmul.f32 %v283_v5, %v282_v7 }
  0x82   :  { %v33_v9 = vsel %vm32_vm1, %v31_v8, 0.0 }
  0x83   :  { %34 = vadd.xlane.f32.xlu0 %v33_v9 }
 0x10c   :  { %v35_v15 = vpop.xlane.xlu0 %34 }
 0x10d   :  { %v381_v16 = vmul.f32 %v310_v14, %v35_v15 }
 0x10f   :  { %v44_v17 = vand.u32 2139095040, %v381_v16  ;;  %v41_v21 = vand.u32 2147483647, %v381_v16  ;;  %vm43_vm9 = vcmp.lt.s32.totalorder %v381_v16, 0  ;;  %vm133_vm1 = vweird.f32 %v381_v16 }
 0x111   :  { %v45_v18 = vshrl.u32 %v44_v17, 23  ;;  %v48_v24 = vand.u32 8388607, %v41_v21  ;;  %vm42_vm10 = vcmp.le.f32.partialorder %v41_v21, 0.7853982 }
 0x113   :  { %v284_v19 = vadd.s32 4294967169, %v45_v18  ;;  %v49_v43 = vor.u32 8388608, %v48_v24 }
 0x115   :  { %v51_v20 = vadd.s32 1, %v284_v19  ;;  %v89_v57 = vshll.u32 %v49_v43, 8 }
 0x117   :  { %vm52_vm2 = vcmp.gt.s32.totalorder %v51_v20, 0 }
 0x118   :  { %v53_v22 = vsel %vm52_vm2, %v51_v20, 0  ;;  %vm260_vm2 = vcmask 31744  }
 0x119   :  { %v55_v23 = vand.u32 31, %v53_v22  ;;  %v54_v26 = vshrl.u32 %v53_v22, 5 }
 0x11b   :  { %v56_v25 = vsub.s32 32, %v55_v23  ;;  %v58_v28 = vshll.u32 %v340_v27, %v55_v23  ;;  %v61_v30 = vshll.u32 %v341_v29, %v55_v23  ;;  %v64_v34 = vshll.u32 %v342_v32, %v55_v23 }
 0x11c   :  { %v67_v37 = vshll.u32 %v343_v35, %v55_v23  ;;  %v70_v40 = vshll.u32 %v344_v38, %v55_v23  ;;  %vm73_vm3 = vcmp.lt.s32.totalorder %v54_v26, 1  ;;  %vm76_vm4 = vcmp.lt.s32.totalorder %v54_v26, 4 }
 0x11d   :  { %v59_v31 = vshrl.u32 %v341_v29, %v56_v25  ;;  %v62_v33 = vshrl.u32 %v342_v32, %v56_v25  ;;  %v65_v36 = vshrl.u32 %v343_v35, %v56_v25  ;;  %v68_v39 = vshrl.u32 %v344_v38, %v56_v25 }
 0x11e   :  { %v71_v42 = vshrl.u32 %v345_v41, %v56_v25  ;;  %v57_v52 = vshrl.u32 %v340_v27, %v56_v25  ;;  %vm75_vm5 = vcmp.lt.s32.totalorder %v54_v26, 3  ;;  %vm74_vm6 = vcmp.lt.s32.totalorder %v54_v26, 2 }
 0x11f   :  { %v60_v44 = vor.u32 %v59_v31, %v58_v28  ;;  %v63_v45 = vor.u32 %v62_v33, %v61_v30  ;;  %v66_v46 = vor.u32 %v65_v36, %v64_v34  ;;  %v69_v47 = vor.u32 %v68_v39, %v67_v37 }
 0x120   :  { %v72_v48 = vor.u32 %v71_v42, %v70_v40 }
 0x121   :  { %v78_v49 = vsel %vm76_vm4, %v66_v46, 2102212464  ;;  %v81_v50 = vsel %vm73_vm3, %v60_v44, %v63_v45  ;;  %v85_v51 = vsel %vm73_vm3, %v63_v45, %v66_v46  ;;  %v82_v53 = vsel %vm76_vm4, %v69_v47, 920167782 }
 0x122   :  { %v86_v54 = vsel %vm76_vm4, %v72_v48, 1326507024  ;;  %v83_v55 = vsel %vm75_vm5, %v66_v46, %v82_v53  ;;  %v77_v58 = vsel %vm73_vm3, %v57_v52, %v60_v44  ;;  %v79_v59 = vsel %vm75_vm5, %v63_v45, %v78_v49 }
 0x123   :  { %v87_v56 = vsel %vm75_vm5, %v69_v47, %v86_v54  ;;  %v84_v60 = vsel %vm74_vm6, %v81_v50, %v83_v55  ;;  %v80_v2 = vsel %vm74_vm6, %v77_v58, %v79_v59  ;;  %vm262_vm3 = vcmask 64512  }
 0x124   :  { %v88_v61 = vsel %vm74_vm6, %v85_v51, %v87_v56  ;;  %v390_v0 = vmul.u32.u64.low %v89_v57, %v84_v60  ;;  %v391_v1 = vmul.u32.u64.high %v89_v57, %v84_v60, %v390_v0  ;;  %v96_v4 = vmul.u32 %v89_v57, %v80_v2  ;;  %v255_v51 = vpop.permute.xlu1 %254 }
 0x125   :  { %v387_v62 = vmul.u32.u64.low %v89_v57, %v88_v61  ;;  %v388_v63 = vmul.u32.u64.high %v89_v57, %v88_v61, %v387_v62  ;;  %vm264_vm4 = vcmask 130048   ;;  %vm266_vm5 = vcmask 195584  }
 0x126   :  { %v99_v3 = vadd.s32 1, %v391_v1 }
 0x127   :  { %vm98_vm7 = vc.u32 %v388_v63, %v390_v0  ;;  %v97_v18 = vadd.s32 %v390_v0, %v388_v63 }
 0x128   :  { %v100_v5 = vsel %vm98_vm7, %v99_v3, %v391_v1 }
 0x129   :  { %v101_v6 = vadd.s32 %v100_v5, %v96_v4 }
 0x12b   :  { %v102_v7 = vadd.s32 536870912, %v101_v6 }
 0x12d   :  { %v103_v8 = vshrl.u32 %v102_v7, 30 }
 0x12f   :  { %v104_v9 = vshll.u32 %v103_v8, 30  ;;  %v127_v32 = vsub.s32 4, %v103_v8 }
 0x131   :  { %v105_v11 = vsub.s32 %v101_v6, %v104_v9  ;;  %v128_v35 = vsel %vm43_vm9, %v127_v32, %v103_v8 }
 0x132   :  { %v130_v36 = vsel %vm42_vm10, 0, %v128_v35 }
 0x133   :  { %v107_v12 = vsub.s32 0, %v105_v11  ;;  %v237_v37 = vadd.s32 3, %v130_v36  ;;  %v134_v38 = vand.u32 3, %v130_v36 }
 0x135   :  { %v285_v13 = vmin.u32 %v107_v12, %v105_v11  ;;  %v238_v39 = vand.u32 3, %v237_v37  ;;  %vm139_vm11 = vcmp.eq.s32.totalorder %v134_v38, 2  ;;  %vm136_vm13 = vcmp.eq.s32.totalorder %v134_v38, 0 }
 0x136   :  { %vm135_vm15 = vcmp.lt.s32.totalorder %v134_v38, 2 }
 0x137   :  { %v109_v14 = vclz %v285_v13  ;;  %vm243_vm12 = vcmp.eq.s32.totalorder %v238_v39, 2  ;;  %vm240_vm14 = vcmp.eq.s32.totalorder %v238_v39, 0  ;;  %vm239_vm0 = vcmp.lt.s32.totalorder %v238_v39, 2 }
 0x139   :  { %v286_v15 = vadd.s32 4294967294, %v109_v14 }
 0x13b   :  { %vm287_vm8 = vcmp.lt.s32.totalorder %v286_v15, 0 }
 0x13c   :  { %v112_v17 = vsel %vm287_vm8, 0, %v286_v15 }
 0x13d   :  { %v113_v19 = vsub.s32 32, %v112_v17  ;;  %v117_v20 = vsub.s32 4294967266, %v112_v17  ;;  %v114_v22 = vshll.u32 %v105_v11, %v112_v17 }
 0x13f   :  { %v115_v23 = vshrl.u32 %v97_v18, %v113_v19  ;;  %v118_v24 = vadd.s32 127, %v117_v20 }
 0x141   :  { %v116_v25 = vor.u32 %v115_v23, %v114_v22  ;;  %v119_v26 = vshll.u32 %v118_v24, 23 }
 0x143   :  { %v120_v27 = vor.u32 4788187, %v119_v26  ;;  %v123_v29 = vcvt.s32.f32 %v116_v25 }
 0x145   :  { %v121_v28 = vand.u32 2147483647, %v120_v27 }
 0x147   :  { %v124_v30 = vmul.f32 %v123_v29, %v121_v28 }
 0x149   :  { %v125_v31 = vxor.u32 2147483648, %v124_v30 }
 0x14b   :  { %v126_v33 = vsel %vm43_vm9, %v125_v31, %v124_v30 }
 0x14c   :  { %v129_v34 = vsel %vm42_vm10, %v381_v16, %v126_v33 }
 0x14d   :  { %311 = vcosq.f32 %v129_v34 }
 0x14e   :  { %313 = vsinq.f32 %v129_v34 }
 0x15a   :  { %v312_v40 = vpop.eup %311 }
 0x15b   :  { %v314_v41 = vpop.eup %313  ;;  %v140_v42 = vxor.u32 2147483648, %v312_v40 }
 0x15c   :  { %v137_v43 = vxor.u32 2147483648, %v314_v41 }
 0x15d   :  { %v245_v44 = vsel %vm243_vm12, %v140_v42, %v314_v41  ;;  %v141_v45 = vsel %vm139_vm11, %v140_v42, %v314_v41 }
 0x15e   :  { %v242_v21 = vsel %vm240_vm14, %v312_v40, %v137_v43  ;;  %v138_v46 = vsel %vm136_vm13, %v312_v40, %v137_v43 }
 0x15f   :  { %v246_v47 = vsel %vm239_vm0, %v242_v21, %v245_v44  ;;  %v142_v48 = vsel %vm135_vm15, %v138_v46, %v141_v45 }
 0x160   :  { %v247_v49 = vsel %vm133_vm1, nan, %v246_v47  ;;  %v143_v50 = vsel %vm133_vm1, nan, %v142_v48 }
 0x161   :  { %250 = vrot.lane.b32.xlu1 %v247_v49, %s346_s1 }
 0x165   :  { %257 = vrot.lane.b32.xlu1 %v378_v10, %s347_s2 }
 0x1d3   :  { %v251_v52 = vpop.permute.xlu1 %250 }
 0x1d4   :  { %v261_v53 = vsel %vm260_vm2, %v143_v50, %v251_v52 }
 0x1d5   :  { %v263_v16 = vsel %vm262_vm3, %v261_v53, %v255_v51 }
 0x1d7   :  { %v258_v54 = vpop.permute.xlu1 %257 }
 0x1d8   :  { %v265_v55 = vsel %vm264_vm4, %v263_v16, %v258_v54 }
 0x1d9   :  { %267 = vst.msk [vmem:[#allocation2] sm:$0xff] %vm266_vm5, %v265_v55 }
 0x1da   :  { %326 = shalt.err (!%p323_p4)
}
 0x1db   :  { %277 = dma.vmem_to_hbm [thread:$0]  %s275_s19, 128, %s409_s3, [#allocation3]  }
 0x1dc   :  { %335 = dma.done.wait [#allocation3], 128  }
 0x1dd   :  { %336 = vsyncadd [#allocation3], 4294967168 }
 0x1de   :  { %281 = vsyncpa [#allocation3], 1 }

</bundles_post_ra>
